<compile_context>
chip_gen: v6e
topology: v6e:2x2x1
jax: 0.10.0
libtpu: 0.0.40
codegen_flags: <defaults>
</compile_context>

<pallas_src>
import functools

import jax
import jax.numpy as jnp
import numpy as np
from jax.experimental import pallas as pl
from jax.experimental.pallas import tpu as pltpu

ALPHA = 0.2        # LeakyReLU negative slope inside GATLayer
NEG_INF = -1e30    # finite mask value; exp underflows to exactly 0 after max subtraction


# ---------------------------------------------------------------------------
# Kernels
# ---------------------------------------------------------------------------
def _indegree_kernel(adjt_ref, deg_ref):
    # adjT[v, u] = 1 iff edge u -> v ; in_degree[v] = row sum (lane-axis reduction).
    deg_ref[...] = jnp.sum(adjt_ref[...].astype(jnp.float32), axis=1, keepdims=True)


def _project_kernel(feat_ref, waug_ref, alp_ref, arp_ref, ftaug_ref, a1_ref, a2_ref):
    """Per-layer, row-tiled projection (hoisted out of the attention kernel).

    feat_ref  : (TM, F_in+1)       node features with a trailing ones column
    waug_ref  : (F_in+1, H*(D+1))  packed per-head W; per head the last output column
                                   routes the ones feature -> fused softmax-denominator
    alp_ref   : (H*(D+1), H)       block-diagonal attn_l (zero on the ones columns)
    arp_ref   : (H*(D+1), H)       block-diagonal attn_r
    ftaug_ref : (TM, H*(D+1))      projected features (+ones col per head), compute dtype
    a1_ref    : (TM, H) f32        src attention term per head
    a2_ref    : (TM, H) f32        dst attention term per head
    """
    cdt = ftaug_ref.dtype
    ft = jnp.dot(feat_ref[...].astype(cdt), waug_ref[...].astype(cdt),
                 preferred_element_type=jnp.float32)                 # (TM, H*(D+1)) f32
    a1_ref[...] = jnp.dot(ft, alp_ref[...], preferred_element_type=jnp.float32)
    a2_ref[...] = jnp.dot(ft, arp_ref[...], preferred_element_type=jnp.float32)
    ftaug_ref[...] = ft.astype(ftaug_ref.dtype)


def _gat_attn_kernel(ftaug_ref, a1t_ref, a2_ref, adjt_ref, out_ref):
    """Masked edge-softmax + aggregation for one destination-row tile, all heads.

    ftaug_ref : (N, H*(D+1))  resident projected features (last col of each head == 1)
    a1t_ref   : (H, N) f32    resident src attention terms
    a2_ref    : (TN, H) f32   dst attention terms for this tile
    adjt_ref  : (TN, N) int8  adjacency^T tile (rows = dst of this tile, lanes = src)
    out_ref   : (TN, H*D)     lane-dense layer output rows for this tile
    """
    num_heads = a1t_ref.shape[0]
    dp1 = ftaug_ref.shape[1] // num_heads
    d = dp1 - 1

    edge = adjt_ref[...].astype(jnp.float32) > 0.0            # (TN, N), hoisted
    outs = []
    for h in range(num_heads):                                 # static unroll, H small
        s = a2_ref[:, h:h + 1] + a1t_ref[h:h + 1, :]           # (TN,1)+(1,N) -> (TN, N)
        s = jnp.where(s > 0, s, ALPHA * s)                     # LeakyReLU
        s = jnp.where(edge, s, NEG_INF)                        # mask non-edges
        m = jnp.max(s, axis=1, keepdims=True)                  # per-dst max (TN, 1)
        # No "* mask" after exp: with >=1 in-edge (self-loops guaranteed) non-edges
        # underflow to exactly 0; padded all-zero columns only affect padded rows,
        # which carry zero pooling weight and never contribute as sources.
        p = jnp.exp(s - m)                                     # unnormalized weights
        ft_h = ftaug_ref[:, h * dp1:(h + 1) * dp1]             # (N, D+1), last col == 1
        # One MXU pass yields both the aggregation and the softmax denominator.
        agg = jnp.dot(p.astype(ftaug_ref.dtype), ft_h,
                      preferred_element_type=jnp.float32)      # (TN, D+1)
        denom = agg[:, d:d + 1]
        inv = pl.reciprocal(jnp.where(denom > 0, denom, 1.0), approx=False)
        out_h = agg[:, :d] * inv
        out_h = jnp.where(out_h > 0, out_h, jnp.exp(out_h) - 1.0)   # ELU
        outs.append(out_h)
    # Single lane-dense store instead of H narrow masked stores.
    out_ref[...] = jnp.concatenate(outs, axis=1).astype(out_ref.dtype)


def _pool_classify_kernel(pool_ref, h_ref, wc_ref, bc_ref, out_ref, acc_ref, *, compute_dtype):
    k = pl.program_id(0)

    @pl.when(k == 0)
    def _():
        acc_ref[...] = jnp.zeros_like(acc_ref)

    acc_ref[...] += jnp.dot(pool_ref[...].astype(compute_dtype),
                            h_ref[...].astype(compute_dtype),
                            preferred_element_type=jnp.float32)

    @pl.when(k == pl.num_programs(0) - 1)
    def _():
        logits = jnp.dot(acc_ref[...], wc_ref[...],
                         preferred_element_type=jnp.float32) + bc_ref[...]
        out_ref[...] = logits.astype(out_ref.dtype)


# ---------------------------------------------------------------------------
# Tiling / budget helpers
# ---------------------------------------------------------------------------
def _round_up(x, m):
    return ((x + m - 1) // m) * m


def _vmem_budget_bytes():
    """Generation-aware VMEM budget: ~3/4 of physical (96 MiB v5e/v6e, 48 MiB v7x)."""
    try:
        cap = int(pltpu.get_tpu_info().vmem_capacity_bytes)
    except Exception:
        cap = 64 * 1024 * 1024            # conservative (v7x-sized) fallback
    return int(min((cap * 3) // 4, 100 * 1024 * 1024))


def _pick_dst_tile(n_pad, num_heads, d, budget):
    """Largest 128-multiple divisor of n_pad (<=1024) whose working set fits the budget."""
    hd = num_heads * d
    resident = n_pad * num_heads * (d + 1) * 2 + n_pad * num_heads * 4   # ft slab + a1^T
    best = 128
    t = 128
    while t <= min(n_pad, 1024):
        if n_pad % t == 0:
            per_step = (2 * t * n_pad            # double-buffered int8 adj^T tile
                        + 12 * t * n_pad         # f32 score/exp temporaries (~3 live)
                        + 2 * t * hd * 4         # double-buffered f32 output tile
                        + 2 * t * num_heads * 4)
            if resident + per_step <= budget:
                best = t
        t += 128
    return best


# ---------------------------------------------------------------------------
# pallas_call wrappers
# ---------------------------------------------------------------------------
def in_degrees(adj_t, tn, budget):
    n_pad = adj_t.shape[0]
    return pl.pallas_call(
        _indegree_kernel,
        out_shape=jax.ShapeDtypeStruct((n_pad, 1), jnp.float32),
        grid=(n_pad // tn,),
        in_specs=[pl.BlockSpec((tn, n_pad), lambda j: (j, 0))],
        out_specs=pl.BlockSpec((tn, 1), lambda j: (j, 0)),
        compiler_params=pltpu.CompilerParams(
            dimension_semantics=("parallel",), vmem_limit_bytes=budget),
    )(adj_t)


def project(feat_aug, w_aug, al_pack, ar_pack, tn, compute_dtype, budget):
    n_pad, f_aug = feat_aug.shape
    hdp1 = w_aug.shape[1]
    num_heads = al_pack.shape[1]
    return pl.pallas_call(
        _project_kernel,
        out_shape=(jax.ShapeDtypeStruct((n_pad, hdp1), compute_dtype),
                   jax.ShapeDtypeStruct((n_pad, num_heads), jnp.float32),
                   jax.ShapeDtypeStruct((n_pad, num_heads), jnp.float32)),
        grid=(n_pad // tn,),
        in_specs=[
            pl.BlockSpec((tn, f_aug), lambda i: (i, 0)),
            pl.BlockSpec((f_aug, hdp1), lambda i: (0, 0)),
            pl.BlockSpec((hdp1, num_heads), lambda i: (0, 0)),
            pl.BlockSpec((hdp1, num_heads), lambda i: (0, 0)),
        ],
        out_specs=(pl.BlockSpec((tn, hdp1), lambda i: (i, 0)),
                   pl.BlockSpec((tn, num_heads), lambda i: (i, 0)),
                   pl.BlockSpec((tn, num_heads), lambda i: (i, 0))),
        compiler_params=pltpu.CompilerParams(
            dimension_semantics=("parallel",), vmem_limit_bytes=budget),
    )(feat_aug, w_aug, al_pack, ar_pack)


def gat_attention(ft_aug, a1_t, a2, adj_t, hd, tn, budget):
    n_pad = adj_t.shape[0]
    num_heads = a1_t.shape[0]
    hdp1 = ft_aug.shape[1]
    return pl.pallas_call(
        _gat_attn_kernel,
        out_shape=jax.ShapeDtypeStruct((n_pad, hd), jnp.float32),
        grid=(n_pad // tn,),
        in_specs=[
            pl.BlockSpec((n_pad, hdp1), lambda j: (0, 0)),       # ft slab: resident
            pl.BlockSpec((num_heads, n_pad), lambda j: (0, 0)),  # a1^T   : resident
            pl.BlockSpec((tn, num_heads), lambda j: (j, 0)),     # a2     : dst-row tile
            pl.BlockSpec((tn, n_pad), lambda j: (j, 0)),         # adj^T  : dst-row tile
        ],
        out_specs=pl.BlockSpec((tn, hd), lambda j: (j, 0)),      # lane-dense output slab
        compiler_params=pltpu.CompilerParams(
            dimension_semantics=("parallel",),                   # no carried state -> v7x 2 TCs
            vmem_limit_bytes=budget),
    )(ft_aug, a1_t, a2, adj_t)


def pool_and_classify(h, pool, wc, bc, tn, compute_dtype, budget):
    b, n_pad = pool.shape
    hd = h.shape[1]
    c = wc.shape[1]
    kernel = functools.partial(_pool_classify_kernel, compute_dtype=compute_dtype)
    return pl.pallas_call(
        kernel,
        out_shape=jax.ShapeDtypeStruct((b, c), jnp.float32),
        grid=(n_pad // tn,),
        in_specs=[
            pl.BlockSpec((b, tn), lambda k: (0, k)),
            pl.BlockSpec((tn, hd), lambda k: (k, 0)),
            pl.BlockSpec((hd, c), lambda k: (0, 0)),
            pl.BlockSpec((1, c), lambda k: (0, 0)),
        ],
        out_specs=pl.BlockSpec((b, c), lambda k: (0, 0)),
        scratch_shapes=[pltpu.VMEM((b, hd), jnp.float32)],
        compiler_params=pltpu.CompilerParams(
            dimension_semantics=("arbitrary",), vmem_limit_bytes=budget),
    )(pool, h, wc, bc)


# ---------------------------------------------------------------------------
# Parameter packing + forward
# ---------------------------------------------------------------------------
def pack_layer_params(w, al, ar):
    """(H,F_in,D),(H,1,D),(H,1,D) -> w_aug (F_in+1, H*(D+1)), attn packs (H*(D+1), H).

    Per head the projection gets an extra output column that multiplies the appended
    ones feature, so ft_aug[:, h*(D+1)+D] == 1 (fused softmax denominator); the
    attention packs are zero on those columns.
    """
    h, f_in, d = w.shape
    dp1 = d + 1
    wt = jnp.transpose(w, (1, 0, 2))                        # (F_in, H, D)
    w_blk = jnp.pad(wt, ((0, 1), (0, 0), (0, 1)))           # (F_in+1, H, D+1)
    w_blk = w_blk.at[f_in, :, d].set(1.0)
    w_aug = w_blk.reshape(f_in + 1, h * dp1)

    def attn_pack(a):
        a_sq = a[:, 0, :]                                   # (H, D)
        t = jnp.eye(h, dtype=a.dtype)[:, :, None] * a_sq[:, None, :]   # (hp, g, D)
        t = jnp.pad(t, ((0, 0), (0, 0), (0, 1)))            # (hp, g, D+1)
        return jnp.transpose(t, (1, 2, 0)).reshape(h * dp1, h)

    return w_aug, attn_pack(al), attn_pack(ar)


def gat_classifier_forward(params, adj, pool, compute_dtype=jnp.bfloat16):
    """Dense-adjacency forward of GATClassifier.

    adj[u, v] == 1 iff directed edge u -> v; pool is the mean-nodes pooling matrix.
    compute_dtype controls MXU operand precision (bf16 default; f32 for exact check).
    """
    n = adj.shape[0]
    num_heads, _, d = params["layers"][0][0].shape
    hd = num_heads * d

    budget = _vmem_budget_bytes()
    n_pad = _round_up(n, 128)
    tn = _pick_dst_tile(n_pad, num_heads, d, budget)

    # adj^T (dst on sublanes, src on lanes) as an int8 0/1 mask, zero-padded to n_pad.
    adj_t = jnp.zeros((n_pad, n_pad), jnp.int8).at[:n, :n].set(adj.T.astype(jnp.int8))
    pool_p = jnp.zeros((pool.shape[0], n_pad), pool.dtype).at[:, :n].set(pool)

    h = in_degrees(adj_t, tn, budget)                                      # (n_pad, 1)
    for (w, al, ar) in params["layers"]:
        w_aug, al_pack, ar_pack = pack_layer_params(w, al, ar)
        feat_aug = jnp.concatenate([h, jnp.ones((n_pad, 1), h.dtype)], axis=1)
        ft_aug, a1, a2 = project(feat_aug, w_aug, al_pack, ar_pack, tn, compute_dtype, budget)
        h = gat_attention(ft_aug, a1.T, a2, adj_t, hd, tn, budget)         # (n_pad, H*D)
    return pool_and_classify(h, pool_p, params["wc"], params["bc"], tn, compute_dtype, budget)


# ---------------------------------------------------------------------------
# Pure-JAX reference (correctness check)
# ---------------------------------------------------------------------------
def _gat_layer_ref(feat, w, al, ar, adj):
    h, f_in, d = w.shape
    n = feat.shape[0]
    ft = jnp.einsum("nf,hfd->hnd", feat, w)               # (H, N, D)
    a1 = jnp.sum(ft * al, axis=-1)                        # (H, N)
    a2 = jnp.sum(ft * ar, axis=-1)                        # (H, N)
    s = a1[:, :, None] + a2[:, None, :]                   # (H, u, v)
    s = jnp.where(s > 0, s, ALPHA * s)
    s = jnp.where(adj[None] > 0, s, NEG_INF)
    s = s - jnp.max(s, axis=1, keepdims=True)
    p = jnp.exp(s) * adj[None]
    denom = jnp.sum(p, axis=1, keepdims=True)
    attn = p / jnp.where(denom > 0, denom, 1.0)
    out = jnp.einsum("huv,hud->hvd", attn, ft)
    out = jnp.where(out > 0, out, jnp.exp(out) - 1.0)
    return jnp.transpose(out, (1, 0, 2)).reshape(n, h * d)


def _forward_ref(params, adj, pool):
    h = jnp.sum(adj, axis=0, keepdims=True).T
    for (w, al, ar) in params["layers"]:
        h = _gat_layer_ref(h, w, al, ar, adj)
    hg = pool @ h
    return hg @ params["wc"] + params["bc"]


# ---------------------------------------------------------------------------
# Parameter init (deterministic, synthetic)
# ---------------------------------------------------------------------------
def init_params(key, in_dim, hidden_dim, num_heads, n_classes):
    layers = []
    for d_in in (in_dim, hidden_dim * num_heads):
        key, k1, k2, k3 = jax.random.split(key, 4)
        w = jax.random.normal(k1, (num_heads, d_in, hidden_dim), jnp.float32) * 0.3
        al = jax.random.normal(k2, (num_heads, 1, hidden_dim), jnp.float32) * 0.3
        ar = jax.random.normal(k3, (num_heads, 1, hidden_dim), jnp.float32) * 0.3
        layers.append((w, al, ar))
    key, k4, k5 = jax.random.split(key, 3)
    wc = jax.random.normal(k4, (hidden_dim * num_heads, n_classes), jnp.float32) * 0.3
    bc = jax.random.normal(k5, (1, n_classes), jnp.float32) * 0.1
    return {"layers": layers, "wc": wc, "bc": bc}


if __name__ == "__main__":
    # Small batched graph: B=2 graphs, 8 nodes each -> N=16 nodes total.
    B, NG = 2, 8
    N = B * NG
    in_dim, hidden_dim, num_heads, n_classes = 1, 8, 4, 3

    key = jax.random.PRNGKey(0)
    key, ka = jax.random.split(key)

    graph_ids = jnp.repeat(jnp.arange(B), NG)
    block_mask = (graph_ids[:, None] == graph_ids[None, :]).astype(jnp.float32)
    rand_adj = (jax.random.uniform(ka, (N, N)) < 0.4).astype(jnp.float32)
    # Block-diagonal adjacency (no cross-graph edges) + self-loops (every node has >=1 in-edge).
    adj = jnp.clip(rand_adj * block_mask + jnp.eye(N, dtype=jnp.float32), 0.0, 1.0)
    # Mean-pooling matrix: pool[g, n] = 1/NG if node n belongs to graph g.
    pool = (jnp.arange(B)[:, None] == graph_ids[None, :]).astype(jnp.float32) / NG

    params = init_params(key, in_dim, hidden_dim, num_heads, n_classes)

    # Production path: bf16 MXU operands, f32 accumulation.
    logits = jax.block_until_ready(gat_classifier_forward(params, adj, pool))
    # Exact-math path (f32 operands) to validate the restructured kernels tightly.
    logits_f32 = jax.block_until_ready(
        gat_classifier_forward(params, adj, pool, compute_dtype=jnp.float32))

    ref = _forward_ref(params, adj, pool)
    np.testing.assert_allclose(np.asarray(logits_f32), np.asarray(ref), rtol=1e-4, atol=1e-4)
    # bf16 MXU operands -> loosened tolerance (per review correctness note).
    np.testing.assert_allclose(np.asarray(logits), np.asarray(ref), rtol=1e-1, atol=1e-1)

    print("KERNEL_OK")
</pallas_src>

<mosaic_0001>
module attributes {stable_mosaic.version = 11 : i64} {
  func.func @_indegree_kernel(%arg0: i32, %arg1: memref<128x128xi8, #tpu.memory_space<vmem>>, %arg2: memref<128x1xf32, #tpu.memory_space<vmem>>) attributes {dimension_semantics = [#tpu.dimension_semantics<parallel>], iteration_bounds = array<i64: 1>, scalar_prefetch = 0 : i64, scratch_operands = 0 : i64, tpu.core_type = #tpu.core_type<tc>, window_params = [{transform_indices = @transform_0, window_bounds = array<i64: 128, 128>}, {transform_indices = @transform_1, window_bounds = array<i64: 128, 1>}]} {
    %c0 = arith.constant 0 : index
    %c0_0 = arith.constant 0 : index
    %0 = vector.load %arg1[%c0, %c0_0] : memref<128x128xi8, #tpu.memory_space<vmem>>, vector<128x128xi8>
    %1 = arith.sitofp %0 : vector<128x128xi8> to vector<128x128xf32>
    %cst = arith.constant dense<0.000000e+00> : vector<128xf32>
    %2 = vector.multi_reduction <add>, %1, %cst [1] : vector<128x128xf32> to vector<128xf32>
    %3 = vector.shape_cast %2 : vector<128xf32> to vector<128x1xf32>
    %c0_1 = arith.constant 0 : index
    %c0_2 = arith.constant 0 : index
    %4 = vector.load %arg2[%c0_1, %c0_2] : memref<128x1xf32, #tpu.memory_space<vmem>>, vector<128x1xf32>
    tpu.vector_store %arg2[%c0_1, %c0_2], %3 {strides = array<i32>} : memref<128x1xf32, #tpu.memory_space<vmem>>, vector<128x1xf32>,
    return
  }
  func.func @transform_0(%arg0: i32) -> (i32, i32) {
    %c0_i32 = arith.constant 0 : i32
    %c0_i32_0 = arith.constant 0 : i32
    return %arg0, %c0_i32 : i32, i32
  }
  func.func @transform_1(%arg0: i32) -> (i32, i32) {
    %c0_i32 = arith.constant 0 : i32
    %c0_i32_0 = arith.constant 0 : i32
    return %arg0, %c0_i32 : i32, i32
  }
}

</mosaic_0001>

<bundles_post_ra>
// kernel: tpu_custom_call.1
= control target key start
LH: loop header
LB: loop body
LE: loop exit
PB: predicated region body
PF: predicated region fallthrough
CT: control target
= control target key end

     0   :  { %6 = vsyncpa [#allocation3], 0  ;;  %s137_s6 = smov [#allocation2]   ;;  %s217_s0 = inlined_call_operand.hbm [shape: s8[128,128], index: 0, kind: input, shape index: {}]   ;;  %s218_s1 = inlined_call_operand.vmem [shape: f32[128,1], index: 1, kind: output, shape index: {}]  }
   0x1   :  { %s12_s7 = sshll.u32 %s137_s6, 4  ;;  %s13_s7 = int_to_ptr.vmem [resolvable:$true] %s12_s7 }
   0x2   :  { %s123_s8 = scalar_lea.vmem %s13_s7, 512  ;;  %p128_p1 = scmp.lt.s32.totalorder %s13_s7, %s13_s7 }
   0x3   :  { %p124_p0 = scmp.ne.s32.totalorder %s13_s7, %s123_s8  ;;  %p129_p2 = scmp.lt.s32.totalorder %s123_s8, %s123_s8 }
   0x5   :  { %p130_p3 = por %p129_p2, %p128_p1 }
   0x7   :  { %p131_p4 = pnand %p130_p3, %p124_p0 }
   0x9   :  { %134 = shalt.err (!%p131_p4)
}
   0xa   :  { %s138_s9 = smov 128   ;;  %s139_s10 = smov 8  }
   0xb   :  { %18 = dma.hbm_to_vmem [thread:$0]  %s217_s0, 512, %s13_s7, [#allocation3], %s138_s9, %s138_s9, %s139_s10  }
   0xc   :  { %135 = dma.done.wait [#allocation3], 512  }
   0xd   :  { %136 = vsyncadd [#allocation3], 4294966784  ;;  %v22_v0 = vld [vmem:[#allocation2] sm:$0xff]  ;;  %v23_v5 = vld [vmem:[#allocation2 + $0x8] sm:$0xff]  ;;  %vm90_vm0 = vcmask 7168  }
   0xe   :  { %v28_v1 = vunpack.c.2.s8 %v22_v0  ;;  %v26_v2 = vunpack.c.0.s8 %v22_v0  ;;  %v29_v3 = vunpack.c.3.s8 %v22_v0  ;;  %v27_v4 = vunpack.c.1.s8 %v22_v0  ;;  %v24_v16 = vld [vmem:[#allocation2 + $0x10] sm:$0xff]  ;;  %v25_v25 = vld [vmem:[#allocation2 + $0x18] sm:$0xff] }
   0xf   :  { %v31_v10 = vunpack.c.1.s8 %v23_v5  ;;  %v30_v11 = vunpack.c.0.s8 %v23_v5  ;;  %v33_v14 = vunpack.c.3.s8 %v23_v5  ;;  %v32_v15 = vunpack.c.2.s8 %v23_v5 }
  0x10   :  { %v44_v6 = vcvt.s32.f32 %v28_v1  ;;  %v42_v7 = vcvt.s32.f32 %v26_v2  ;;  %v45_v8 = vcvt.s32.f32 %v29_v3  ;;  %v43_v9 = vcvt.s32.f32 %v27_v4 }
  0x11   :  { %v47_v12 = vcvt.s32.f32 %v31_v10  ;;  %v46_v13 = vcvt.s32.f32 %v30_v11  ;;  %v49_v17 = vcvt.s32.f32 %v33_v14  ;;  %v48_v18 = vcvt.s32.f32 %v32_v15 }
  0x12   :  { %62 = vadd.xlane.f32.xlu1 %v44_v6  ;;  %58 = vadd.xlane.f32.xlu0 %v42_v7  ;;  %v35_v19 = vunpack.c.1.s8 %v24_v16  ;;  %v34_v20 = vunpack.c.0.s8 %v24_v16  ;;  %v37_v23 = vunpack.c.3.s8 %v24_v16  ;;  %v36_v24 = vunpack.c.2.s8 %v24_v16 }
  0x13   :  { %v39_v28 = vunpack.c.1.s8 %v25_v25  ;;  %v38_v29 = vunpack.c.0.s8 %v25_v25  ;;  %v41_v32 = vunpack.c.3.s8 %v25_v25  ;;  %v40_v33 = vunpack.c.2.s8 %v25_v25 }
  0x14   :  { %v51_v21 = vcvt.s32.f32 %v35_v19  ;;  %v50_v22 = vcvt.s32.f32 %v34_v20  ;;  %v53_v26 = vcvt.s32.f32 %v37_v23  ;;  %v52_v27 = vcvt.s32.f32 %v36_v24 }
  0x15   :  { %v55_v30 = vcvt.s32.f32 %v39_v28  ;;  %v54_v31 = vcvt.s32.f32 %v38_v29  ;;  %v57_v34 = vcvt.s32.f32 %v41_v32  ;;  %v56_v35 = vcvt.s32.f32 %v40_v33 }
  0x16   :  { %64 = vadd.xlane.f32.xlu1 %v45_v8  ;;  %60 = vadd.xlane.f32.xlu0 %v43_v9 }
  0x1a   :  { %68 = vadd.xlane.f32.xlu1 %v47_v12  ;;  %66 = vadd.xlane.f32.xlu0 %v46_v13 }
  0x1e   :  { %72 = vadd.xlane.f32.xlu1 %v49_v17  ;;  %70 = vadd.xlane.f32.xlu0 %v48_v18 }
  0x22   :  { %76 = vadd.xlane.f32.xlu1 %v51_v21  ;;  %74 = vadd.xlane.f32.xlu0 %v50_v22 }
  0x26   :  { %80 = vadd.xlane.f32.xlu1 %v53_v26  ;;  %78 = vadd.xlane.f32.xlu0 %v52_v27 }
  0x2a   :  { %84 = vadd.xlane.f32.xlu1 %v55_v30  ;;  %82 = vadd.xlane.f32.xlu0 %v54_v31 }
  0x2e   :  { %88 = vadd.xlane.f32.xlu1 %v57_v34  ;;  %86 = vadd.xlane.f32.xlu0 %v56_v35 }
  0x9b   :  { %v63_v36 = vpop.xlane.xlu1 %62  ;;  %v59_v37 = vpop.xlane.xlu0 %58 }
  0x9c   :  { %93 = vst.msk [vmem:[%s218_s1 + $0x10] sm:$0xff] %vm90_vm0, %v63_v36  ;;  %91 = vst.msk [vmem:[%s218_s1] sm:$0xff] %vm90_vm0, %v59_v37 }
  0x9f   :  { %v65_v38 = vpop.xlane.xlu1 %64  ;;  %v61_v39 = vpop.xlane.xlu0 %60 }
  0xa0   :  { %94 = vst.msk [vmem:[%s218_s1 + $0x18] sm:$0xff] %vm90_vm0, %v65_v38  ;;  %92 = vst.msk [vmem:[%s218_s1 + $0x8] sm:$0xff] %vm90_vm0, %v61_v39 }
  0xa3   :  { %v69_v40 = vpop.xlane.xlu1 %68  ;;  %v67_v41 = vpop.xlane.xlu0 %66 }
  0xa4   :  { %96 = vst.msk [vmem:[%s218_s1 + $0x28] sm:$0xff] %vm90_vm0, %v69_v40  ;;  %95 = vst.msk [vmem:[%s218_s1 + $0x20] sm:$0xff] %vm90_vm0, %v67_v41 }
  0xa7   :  { %v73_v42 = vpop.xlane.xlu1 %72  ;;  %v71_v43 = vpop.xlane.xlu0 %70 }
  0xa8   :  { %98 = vst.msk [vmem:[%s218_s1 + $0x38] sm:$0xff] %vm90_vm0, %v73_v42  ;;  %97 = vst.msk [vmem:[%s218_s1 + $0x30] sm:$0xff] %vm90_vm0, %v71_v43 }
  0xab   :  { %v77_v44 = vpop.xlane.xlu1 %76  ;;  %v75_v45 = vpop.xlane.xlu0 %74 }
  0xac   :  { %100 = vst.msk [vmem:[%s218_s1 + $0x48] sm:$0xff] %vm90_vm0, %v77_v44  ;;  %99 = vst.msk [vmem:[%s218_s1 + $0x40] sm:$0xff] %vm90_vm0, %v75_v45 }
  0xaf   :  { %v81_v46 = vpop.xlane.xlu1 %80  ;;  %v79_v47 = vpop.xlane.xlu0 %78 }
  0xb0   :  { %102 = vst.msk [vmem:[%s218_s1 + $0x58] sm:$0xff] %vm90_vm0, %v81_v46  ;;  %101 = vst.msk [vmem:[%s218_s1 + $0x50] sm:$0xff] %vm90_vm0, %v79_v47 }
  0xb3   :  { %v85_v48 = vpop.xlane.xlu1 %84  ;;  %v83_v49 = vpop.xlane.xlu0 %82 }
  0xb4   :  { %104 = vst.msk [vmem:[%s218_s1 + $0x68] sm:$0xff] %vm90_vm0, %v85_v48  ;;  %103 = vst.msk [vmem:[%s218_s1 + $0x60] sm:$0xff] %vm90_vm0, %v83_v49 }
  0xb7   :  { %v89_v50 = vpop.xlane.xlu1 %88  ;;  %v87_v51 = vpop.xlane.xlu0 %86 }
  0xb8   :  { %106 = vst.msk [vmem:[%s218_s1 + $0x78] sm:$0xff] %vm90_vm0, %v89_v50  ;;  %105 = vst.msk [vmem:[%s218_s1 + $0x70] sm:$0xff] %vm90_vm0, %v87_v51 }
  0xb9   :  { %111 = vsyncpa [#allocation3], 1 }

</bundles_post_ra>
